<compile_context>
chip_gen: v7x
topology: tpu7x:2x2x1
jax: 0.10.0
libtpu: 0.0.40
codegen_flags: <defaults>
</compile_context>

<pallas_src>
import math

import jax
import jax.numpy as jnp
from jax import lax
from jax.experimental import pallas as pl
from jax.experimental.pallas import tpu as pltpu

_LANE = 128
_FOLD_TARGET = 256          # grow the lane-fold factor until block width reaches this
_RESIDENT_MAX_ROWS = 256    # per-row gather loop stays cheap below this
_RESIDENT_MAX_BYTES = 2 << 20
_MAX_GATHER_ROWS_PER_BLOCK = 512   # bound per-block DMA-descriptor count


def _round_up(v: int, m: int) -> int:
    return -(-v // m) * m


def _sublane_align(itemsize: int) -> int:
    # f32 -> 8, bf16 -> 16, int8/fp8 -> 32 (sub-32-bit dtypes pack along sublanes).
    return {4: 8, 2: 16, 1: 32}.get(itemsize, 8)


def _compute_dtype(out_dtype):
    # Native-dtype math for bf16 (v6e/v7x have bf16 VALUs, halves vreg pressure);
    # everything else is mixed in f32.
    return jnp.bfloat16 if out_dtype == jnp.bfloat16 else jnp.float32


def _vmem_limit_bytes() -> int:
    """Generation-aware scoped-VMEM limit (conservative, with headroom)."""
    cap = 64 << 20
    try:
        info = pltpu.get_tpu_info()
        cap = int(getattr(info, "vmem_capacity_bytes", cap)) or cap
    except Exception:
        pass
    if cap >= (100 << 20):      # v5e / v6e: 128 MiB physical VMEM
        return 96 << 20
    return 40 << 20             # v7x: 64 MiB physical -> modest bump over 32 MiB default


def _default_block_bytes(vmem_limit: int) -> int:
    # Bigger tiles amortize the ~0.35 us per-grid-step overhead; go larger on the
    # 128-MiB chips, stay moderate on v7x's 64 MiB.
    return (4 << 20) if vmem_limit >= (64 << 20) else (3 << 20)


# ---------------------------------------------------------------------------
# Path 1: VMEM-resident fast path (small inputs) — fused gather, 2*B*D HBM bytes.
# ---------------------------------------------------------------------------
def _resident_kernel(perm_ref, alpha_ref, x_ref, o_ref, xf_ref, acc_ref):
    # The row gather reads from the f32 VMEM copy so dynamic single-row slices never
    # touch a packed (bf16/int8) layout; the output is written once, full-block.
    # TODO(synk): replace the per-row loop with a vectorized in-VMEM gather
    # (jnp.take / tpu dynamic_gather) to lift the row-count ceiling of this path.
    xf_ref[...] = x_ref[...].astype(jnp.float32)
    nrows = x_ref.shape[0]

    def body(r, carry):
        p = perm_ref[r]
        a = alpha_ref[pl.ds(r, 1), :]                 # (1, 1) f32
        xr = xf_ref[pl.ds(r, 1), :]                   # (1, D) f32
        xp = xf_ref[pl.ds(p, 1), :]
        acc_ref[pl.ds(r, 1), :] = xr + a * (xp - xr)
        return carry

    lax.fori_loop(0, nrows, body, 0)
    o_ref[...] = acc_ref[...].astype(o_ref.dtype)


def _mixup_resident(x, perm, alpha, *, vmem_limit):
    batch, dim = x.shape
    return pl.pallas_call(
        _resident_kernel,
        out_shape=jax.ShapeDtypeStruct((batch, dim), x.dtype),
        grid_spec=pltpu.PrefetchScalarGridSpec(
            num_scalar_prefetch=1,
            grid=(1,),
            in_specs=[pl.BlockSpec((batch, 1), lambda i, perm_ref: (0, 0)),
                      pl.BlockSpec((batch, dim), lambda i, perm_ref: (0, 0))],
            out_specs=pl.BlockSpec((batch, dim), lambda i, perm_ref: (0, 0)),
            scratch_shapes=[pltpu.VMEM((batch, dim), jnp.float32),
                            pltpu.VMEM((batch, dim), jnp.float32)]),
        compiler_params=pltpu.CompilerParams(
            dimension_semantics=("arbitrary",),
            vmem_limit_bytes=vmem_limit),
    )(perm.astype(jnp.int32), alpha.astype(jnp.float32).reshape(batch, 1), x)


# ---------------------------------------------------------------------------
# Path 2: fused in-kernel DMA gather (32-bit dtypes, D % 128 == 0) — 3*B*D HBM bytes.
# ---------------------------------------------------------------------------
def _fused_gather_kernel(perm_ref, alpha_ref, x_ref, xsrc_ref, o_ref, gbuf, sem):
    i = pl.program_id(0)
    j = pl.program_id(1)
    tm, tn = gbuf.shape
    col = pl.multiple_of(j * tn, _LANE)
    row0 = i * tm

    def issue(r, carry):
        src_row = perm_ref[row0 + r]
        pltpu.make_async_copy(
            xsrc_ref.at[pl.ds(src_row, 1), pl.ds(col, tn)],
            gbuf.at[pl.ds(r, 1), :],
            sem.at[0]).start()
        return carry

    lax.fori_loop(0, tm, issue, 0)

    def drain(r, carry):
        # Same-shaped descriptor; total waited bytes == total signalled bytes.
        pltpu.make_async_copy(
            xsrc_ref.at[pl.ds(0, 1), pl.ds(0, tn)],
            gbuf.at[pl.ds(r, 1), :],
            sem.at[0]).wait()
        return carry

    lax.fori_loop(0, tm, drain, 0)

    cdt = _compute_dtype(o_ref.dtype)
    a = alpha_ref[...].astype(cdt)            # (tm, 1)
    x = x_ref[...].astype(cdt)                # (tm, tn)
    xp = gbuf[...].astype(cdt)
    o_ref[...] = (x + a * (xp - x)).astype(o_ref.dtype)


def _fused_tiles(batch, dim, itemsize, block_bytes, vmem_limit, row_block):
    sub = _sublane_align(itemsize)
    # Column tile: a multiple of 128 that divides dim (so gather DMAs never run past a
    # row) and still leaves room for >= 8 rows per block.
    units = dim // _LANE
    target = max(_LANE, block_bytes // (8 * itemsize))
    tn = _LANE
    for f in range(1, units + 1):
        if units % f == 0 and f * _LANE <= target:
            tn = f * _LANE
    if row_block is not None:
        tm = max(sub, _round_up(row_block, sub))          # validate sublane alignment
    else:
        tm = max(sub, (block_bytes // (tn * itemsize)) // sub * sub)
        # Working set: x/out double-buffered + gather buffer + f32 intermediates.
        while tm > sub and tm * tn * (5 * itemsize + 16) > vmem_limit // 2:
            tm = max(sub, (tm // 2) // sub * sub)
    tm = min(tm, _MAX_GATHER_ROWS_PER_BLOCK)
    if tm >= batch:
        tm = batch
    # Make sure multi-TensorCore chips (v7x) get >= 2 parallel grid steps.
    if row_block is None and (-(-batch // tm)) * (-(-dim // tn)) < 2 and batch > sub:
        half = _round_up(-(-batch // 2), sub)
        if half < batch:
            tm = half
    return tm, tn


def _mixup_fused(x, perm, alpha, *, block_bytes, vmem_limit, row_block):
    batch, dim = x.shape
    itemsize = jnp.dtype(x.dtype).itemsize
    tm, tn = _fused_tiles(batch, dim, itemsize, block_bytes, vmem_limit, row_block)
    gm, gn = -(-batch // tm), -(-dim // tn)

    # The kernel indexes perm for every row of every (possibly partial) row block, so
    # pad it to gm*tm entries.  Pad value 0 gathers a valid row; the corresponding
    # output rows fall outside the array and are clipped on writeback.
    perm_pad = jnp.pad(perm.astype(jnp.int32), (0, gm * tm - batch))
    alpha2d = alpha.astype(jnp.float32).reshape(batch, 1)

    x_spec = pl.BlockSpec((tm, tn), lambda i, j, perm_ref: (i, j))
    a_spec = pl.BlockSpec((tm, 1), lambda i, j, perm_ref: (i, 0))
    any_spec = pl.BlockSpec(memory_space=pl.ANY)     # raw HBM ref for the row gather

    return pl.pallas_call(
        _fused_gather_kernel,
        out_shape=jax.ShapeDtypeStruct((batch, dim), x.dtype),
        grid_spec=pltpu.PrefetchScalarGridSpec(
            num_scalar_prefetch=1,
            grid=(gm, gn),
            in_specs=[a_spec, x_spec, any_spec],
            out_specs=x_spec,
            scratch_shapes=[pltpu.VMEM((tm, tn), x.dtype),
                            pltpu.SemaphoreType.DMA((1,))]),
        compiler_params=pltpu.CompilerParams(
            dimension_semantics=("parallel", "parallel"),
            vmem_limit_bytes=vmem_limit),
    )(perm_pad, alpha2d, x, x)


# ---------------------------------------------------------------------------
# Path 3: fallback streaming kernels (wrapper gather), lane-folded when D % 128 != 0.
# ---------------------------------------------------------------------------
def _mixup_kernel(alpha_ref, x_ref, xp_ref, o_ref):
    cdt = _compute_dtype(o_ref.dtype)
    a = alpha_ref[...].astype(cdt)            # (tm, 1)
    x = x_ref[...].astype(cdt)
    xp = xp_ref[...].astype(cdt)
    o_ref[...] = (x + a * (xp - x)).astype(o_ref.dtype)


def _mixup_kernel_folded(sel_ref, alpha_ref, x_ref, xp_ref, o_ref):
    cdt = _compute_dtype(o_ref.dtype)
    # 0/1 selector expands per-row alpha to the lane-folded layout.  HIGHEST keeps the
    # f32 matmul ~f32-accurate (not guaranteed bit-identical to the VPU broadcast path).
    w = jnp.dot(alpha_ref[...], sel_ref[...],
                preferred_element_type=jnp.float32,
                precision=lax.Precision.HIGHEST).astype(cdt)     # (tm, tn)
    x = x_ref[...].astype(cdt)
    xp = xp_ref[...].astype(cdt)
    o_ref[...] = (x + w * (xp - x)).astype(o_ref.dtype)


def _choose_fold(batch: int, dim: int) -> int:
    if dim % _LANE == 0:
        return 1
    k = _LANE // math.gcd(dim, _LANE)
    while batch % (2 * k) == 0 and k * dim < _FOLD_TARGET:
        k *= 2
    return k


def _folded_tiles(m, n, itemsize, block_bytes, vmem_limit, row_block):
    sub = _sublane_align(itemsize)
    if n % _LANE == 0:
        max_tn = max(_LANE, (block_bytes // (sub * itemsize)) // _LANE * _LANE)
        tn = min(n, max_tn)
    else:
        tn = n
    if row_block is not None:
        tm = max(sub, _round_up(row_block, sub))          # validate sublane alignment
    else:
        tm = max(sub, (block_bytes // (tn * itemsize)) // sub * sub)
        # x / x_perm / out blocks all double-buffered + f32 intermediates.
        while tm > sub and tm * tn * (6 * itemsize + 16) > vmem_limit // 2:
            tm = max(sub, (tm // 2) // sub * sub)
    if tm >= m:
        tm = m
    if row_block is None and (-(-m // tm)) * (-(-n // tn)) < 2 and m > sub:
        half = _round_up(-(-m // 2), sub)
        if half < m:
            tm = half
    return tm, tn


def _mixup_folded(x, perm, alpha, *, block_bytes, vmem_limit, row_block):
    batch, dim = x.shape
    k = _choose_fold(batch, dim)
    pad = (-batch) % k
    if pad:
        # Pad a handful of rows so the lane-fold stays lane-dense (unmasked vst)
        # instead of running the whole kernel with masked <128-lane stores.
        x = jnp.pad(x, ((0, pad), (0, 0)))
        alpha = jnp.pad(alpha, (0, pad))
        perm = jnp.pad(perm, (0, pad))
    bp = batch + pad
    # TODO(synk): fuse this gather in-kernel for packed (bf16/int8) dtypes as well —
    # needs the u32-bitcast row-packing trick for the per-row DMA destinations.
    x_perm = jnp.take(x, perm, axis=0)

    m, n = bp // k, dim * k
    x2d = x.reshape(m, n)
    xp2d = x_perm.reshape(m, n)
    alpha2d = alpha.astype(jnp.float32).reshape(m, k)

    itemsize = jnp.dtype(x.dtype).itemsize
    tm, tn = _folded_tiles(m, n, itemsize, block_bytes, vmem_limit, row_block)
    grid = (-(-m // tm), -(-n // tn))

    x_spec = pl.BlockSpec((tm, tn), lambda i, j: (i, j))
    a_spec = pl.BlockSpec((tm, k), lambda i, j: (i, 0))

    if k == 1:
        kernel = _mixup_kernel
        in_specs = [a_spec, x_spec, x_spec]
        operands = (alpha2d, x2d, xp2d)
        alias_idx = 2
    else:
        sel = (jnp.arange(n)[None, :] // dim == jnp.arange(k)[:, None]).astype(jnp.float32)
        sel_spec = pl.BlockSpec((k, tn), lambda i, j: (0, j))
        kernel = _mixup_kernel_folded
        in_specs = [sel_spec, a_spec, x_spec, x_spec]
        operands = (sel, alpha2d, x2d, xp2d)
        alias_idx = 3

    out = pl.pallas_call(
        kernel,
        out_shape=jax.ShapeDtypeStruct((m, n), x.dtype),
        grid_spec=pltpu.PrefetchScalarGridSpec(
            num_scalar_prefetch=0,
            grid=grid,
            in_specs=in_specs,
            out_specs=x_spec),
        # x_perm is a throwaway temporary with the output's shape/dtype: alias it to
        # the output to drop one (B, D) HBM allocation.
        input_output_aliases={alias_idx: 0},
        compiler_params=pltpu.CompilerParams(
            dimension_semantics=("parallel", "parallel"),
            vmem_limit_bytes=vmem_limit),
    )(*operands)

    out = out.reshape(bp, dim)
    return out[:batch] if pad else out


# ---------------------------------------------------------------------------
# Public entry points.
# ---------------------------------------------------------------------------
def _vector_mixup(x, perm, alpha, *, block_bytes=None, row_block=None, path="auto"):
    """Pallas TPU implementation of the VectorMixup mixing step.

    x: (B, D); perm: (B,) permutation of range(B); alpha: (B,) per-row weights
    (already min(beta, 1 - beta)).
    """
    assert x.ndim == 2, "VectorMixup mixes along the batch dim of a (B, D) tensor"
    batch, dim = x.shape
    assert perm.shape == (batch,) and alpha.shape == (batch,)
    itemsize = jnp.dtype(x.dtype).itemsize

    vmem_limit = _vmem_limit_bytes()
    if block_bytes is None:
        block_bytes = _default_block_bytes(vmem_limit)

    if path == "auto":
        data_bytes = batch * dim * itemsize
        resident_need = batch * dim * (2 * itemsize + 8) + 8 * batch
        if (batch <= _RESIDENT_MAX_ROWS and data_bytes <= _RESIDENT_MAX_BYTES
                and resident_need <= vmem_limit // 2):
            path = "resident"
        elif dim % _LANE == 0 and itemsize == 4:
            path = "fused"
        else:
            path = "folded"

    if path == "resident":
        return _mixup_resident(x, perm, alpha, vmem_limit=vmem_limit)
    if path == "fused":
        assert dim % _LANE == 0 and itemsize == 4, (
            "fused gather path needs a 32-bit dtype and D % 128 == 0")
        return _mixup_fused(x, perm, alpha, block_bytes=block_bytes,
                            vmem_limit=vmem_limit, row_block=row_block)
    return _mixup_folded(x, perm, alpha, block_bytes=block_bytes,
                         vmem_limit=vmem_limit, row_block=row_block)


vector_mixup = jax.jit(_vector_mixup, static_argnames=("block_bytes", "row_block", "path"))


def vector_mixup_train(x, key, *, alpha: float = 0.1, training: bool = True,
                       block_bytes=None, row_block=None, path="auto"):
    """Full VectorMixup.forward: identity in eval mode, random per-row mix in training."""
    if not training:
        return x
    kperm, kbeta = jax.random.split(key)
    batch = x.shape[0]
    perm = jax.random.permutation(kperm, batch)
    beta = jax.random.beta(kbeta, alpha, alpha, (batch,))
    a = jnp.minimum(beta, 1.0 - beta)                 # == VectorMixup.sample_alpha
    return vector_mixup(x, perm, a, block_bytes=block_bytes,
                        row_block=row_block, path=path)


if __name__ == "__main__":
    key = jax.random.PRNGKey(0)
    keys = jax.random.split(key, 12)

    def ref_mix(x, perm, a):
        xf = x.astype(jnp.float32)
        r = (1.0 - a[:, None]) * xf + a[:, None] * xf[perm]
        return r.astype(x.dtype)

    def make_case(kx, kp, kb, b, d, dtype):
        x = jax.random.normal(kx, (b, d), dtype=jnp.float32).astype(dtype)
        perm = jax.random.permutation(kp, b)
        beta = jax.random.beta(kb, 0.1, 0.1, (b,))
        a = jnp.minimum(beta, 1.0 - beta)
        return x, perm, a

    def check(out, x, perm, a, tol):
        ref = ref_mix(x, perm, a)
        assert out.shape == x.shape and out.dtype == x.dtype
        err = jnp.max(jnp.abs(out.astype(jnp.float32) - ref.astype(jnp.float32)))
        assert jnp.allclose(out.astype(jnp.float32), ref.astype(jnp.float32),
                            rtol=tol, atol=tol), float(err)

    # 1) Small f32 (B, D) -> VMEM-resident fused-gather path (auto routing).
    x1, p1, a1 = make_case(keys[0], keys[1], keys[2], 16, 32, jnp.float32)
    check(jax.block_until_ready(vector_mixup(x1, p1, a1)), x1, p1, a1, 1e-5)

    # 2) Small bf16 -> resident path (packed dtype handled via f32 VMEM scratch).
    x2, p2, a2 = make_case(keys[3], keys[4], keys[5], 64, 256, jnp.bfloat16)
    check(jax.block_until_ready(vector_mixup(x2, p2, a2)), x2, p2, a2, 3e-2)

    # 3) Lane-aligned f32 above the resident threshold -> fused in-kernel DMA gather
    #    with default (generation-aware) tiling and the >=2-step grid split.
    x3, p3, a3 = make_case(keys[6], keys[7], keys[8], 320, 128, jnp.float32)
    check(jax.block_until_ready(vector_mixup(x3, p3, a3)), x3, p3, a3, 1e-5)

    # 4) Fused path with explicit small tiles: partial final row block + 2 column blocks.
    x4, p4, a4 = make_case(keys[9], keys[10], keys[11], 40, 256, jnp.float32)
    out4 = jax.block_until_ready(
        vector_mixup(x4, p4, a4, path="fused", row_block=16, block_bytes=4096))
    check(out4, x4, p4, a4, 1e-5)

    # 5) Non-lane-aligned D with batch % fold != 0 -> folded fallback with row padding
    #    and x_perm -> out aliasing.
    x5, p5, a5 = make_case(keys[0], keys[4], keys[8], 18, 32, jnp.float32)
    out5 = jax.block_until_ready(vector_mixup(x5, p5, a5, path="folded"))
    check(out5, x5, p5, a5, 1e-5)

    # 6) Large packed dtype with lane-aligned D -> unfolded streaming fallback (k == 1).
    x6, p6, a6 = make_case(keys[2], keys[5], keys[7], 320, 128, jnp.bfloat16)
    out6 = jax.block_until_ready(vector_mixup(x6, p6, a6, path="folded"))
    check(out6, x6, p6, a6, 3e-2)

    # 7) Full forward: sampling in the wrapper (training) and identity (eval).
    out7 = jax.block_until_ready(vector_mixup_train(x1, keys[6], alpha=0.1))
    assert out7.shape == x1.shape and out7.dtype == x1.dtype
    assert jnp.array_equal(vector_mixup_train(x1, keys[6], training=False), x1)

    print("KERNEL_OK")
</pallas_src>

<mosaic_0001>
module attributes {stable_mosaic.version = 11 : i64} {
  func.func @_resident_kernel(%arg0: i32, %arg1: memref<16xi32, #tpu.memory_space<smem>>, %arg2: memref<16x1xf32, #tpu.memory_space<vmem>>, %arg3: memref<16x32xf32, #tpu.memory_space<vmem>>, %arg4: memref<16x32xf32, #tpu.memory_space<vmem>>, %arg5: memref<16x32xf32, #tpu.memory_space<vmem>>, %arg6: memref<16x32xf32, #tpu.memory_space<vmem>>) attributes {dimension_semantics = [#tpu.dimension_semantics<arbitrary>], iteration_bounds = array<i64: 1>, scalar_prefetch = 1 : i64, scratch_operands = 2 : i64, tpu.core_type = #tpu.core_type<tc>, window_params = [{pipeline_mode = #tpu.pipeline_mode<synchronous>, transform_indices = @transform_0, window_bounds = array<i64: 16, 1>}, {pipeline_mode = #tpu.pipeline_mode<synchronous>, transform_indices = @transform_1, window_bounds = array<i64: 16, 32>}, {pipeline_mode = #tpu.pipeline_mode<synchronous>, transform_indices = @transform_2, window_bounds = array<i64: 16, 32>}]} {
    %c0 = arith.constant 0 : index
    %c0_0 = arith.constant 0 : index
    %0 = vector.load %arg3[%c0, %c0_0] : memref<16x32xf32, #tpu.memory_space<vmem>>, vector<16x32xf32>
    %c0_1 = arith.constant 0 : index
    %c0_2 = arith.constant 0 : index
    %1 = vector.load %arg5[%c0_1, %c0_2] : memref<16x32xf32, #tpu.memory_space<vmem>>, vector<16x32xf32>
    tpu.vector_store %arg5[%c0_1, %c0_2], %0 {strides = array<i32>} : memref<16x32xf32, #tpu.memory_space<vmem>>, vector<16x32xf32>,
    %c0_i32 = arith.constant 0 : i32
    %c16_i32 = arith.constant 16 : i32
    %2 = arith.addi %c0_i32, %c16_i32 : i32
    %c1_i32 = arith.constant 1 : i32
    scf.for %arg7 = %c0_i32 to %2 step %c1_i32  : i32 {
      %5 = arith.index_cast %arg7 : i32 to index
      %6 = memref.load %arg1[%5] : memref<16xi32, #tpu.memory_space<smem>>
      %7 = arith.index_cast %arg7 : i32 to index
      %c0_8 = arith.constant 0 : index
      %8 = vector.load %arg2[%7, %c0_8] : memref<16x1xf32, #tpu.memory_space<vmem>>, vector<1x1xf32>
      %9 = arith.index_cast %arg7 : i32 to index
      %c0_9 = arith.constant 0 : index
      %10 = vector.load %arg5[%9, %c0_9] : memref<16x32xf32, #tpu.memory_space<vmem>>, vector<1x32xf32>
      %11 = arith.index_cast %6 : i32 to index
      %c0_10 = arith.constant 0 : index
      %12 = vector.load %arg5[%11, %c0_10] : memref<16x32xf32, #tpu.memory_space<vmem>>, vector<1x32xf32>
      %13 = arith.subf %12, %10 : vector<1x32xf32>
      %14 = vector.broadcast %8 : vector<1x1xf32> to vector<1x32xf32>
      %15 = arith.mulf %14, %13 : vector<1x32xf32>
      %16 = arith.addf %10, %15 : vector<1x32xf32>
      %17 = arith.index_cast %arg7 : i32 to index
      %c0_11 = arith.constant 0 : index
      %18 = vector.load %arg6[%17, %c0_11] : memref<16x32xf32, #tpu.memory_space<vmem>>, vector<1x32xf32>
      tpu.vector_store %arg6[%17, %c0_11], %16 {strides = array<i32>} : memref<16x32xf32, #tpu.memory_space<vmem>>, vector<1x32xf32>,
    }
    %c16_i32_3 = arith.constant 16 : i32
    %c0_4 = arith.constant 0 : index
    %c0_5 = arith.constant 0 : index
    %3 = vector.load %arg6[%c0_4, %c0_5] : memref<16x32xf32, #tpu.memory_space<vmem>>, vector<16x32xf32>
    %c0_6 = arith.constant 0 : index
    %c0_7 = arith.constant 0 : index
    %4 = vector.load %arg4[%c0_6, %c0_7] : memref<16x32xf32, #tpu.memory_space<vmem>>, vector<16x32xf32>
    tpu.vector_store %arg4[%c0_6, %c0_7], %3 {strides = array<i32>} : memref<16x32xf32, #tpu.memory_space<vmem>>, vector<16x32xf32>,
    return
  }
  func.func @transform_0(%arg0: i32, %arg1: memref<16xi32, #tpu.memory_space<smem>>) -> (i32, i32) {
    %c0_i32 = arith.constant 0 : i32
    %c0_i32_0 = arith.constant 0 : i32
    %c0_i32_1 = arith.constant 0 : i32
    return %c0_i32, %c0_i32_0 : i32, i32
  }
  func.func @transform_1(%arg0: i32, %arg1: memref<16xi32, #tpu.memory_space<smem>>) -> (i32, i32) {
    %c0_i32 = arith.constant 0 : i32
    %c0_i32_0 = arith.constant 0 : i32
    %c0_i32_1 = arith.constant 0 : i32
    return %c0_i32, %c0_i32_0 : i32, i32
  }
  func.func @transform_2(%arg0: i32, %arg1: memref<16xi32, #tpu.memory_space<smem>>) -> (i32, i32) {
    %c0_i32 = arith.constant 0 : i32
    %c0_i32_0 = arith.constant 0 : i32
    %c0_i32_1 = arith.constant 0 : i32
    return %c0_i32, %c0_i32_0 : i32, i32
  }
}

</mosaic_0001>

<bundles_post_ra>
// kernel: _vector_mixup.1
= control target key start
LH: loop header
LB: loop body
LE: loop exit
PB: predicated region body
PF: predicated region fallthrough
CT: control target
= control target key end

     0   :  { %s190_s0 = inlined_call_operand.vmem [shape: s32[16], index: 0, kind: input, shape index: {}]   ;;  %s191_s1 = inlined_call_operand.vmem [shape: f32[16,1], index: 1, kind: input, shape index: {}]   ;;  %s192_s2 = inlined_call_operand.vmem [shape: f32[16,32], index: 2, kind: input, shape index: {}]   ;;  %s193_s3 = inlined_call_operand.hbm [shape: f32[16,32], index: 3, kind: output, shape index: {}]  }
   0x1   :  { %s8_s14 = sshll.u32 %s190_s0, 4  ;;  %s9_s14 = int_to_ptr.vmem [resolvable:$true] %s8_s14 }
   0x2   :  { %s91_s15 = scalar_lea.vmem %s9_s14, 16  ;;  %p96_p1 = scmp.lt.s32.totalorder %s9_s14, %s9_s14 }
   0x3   :  { %p92_p0 = scmp.ne.s32.totalorder %s9_s14, %s91_s15  ;;  %p97_p2 = scmp.lt.s32.totalorder %s91_s15, %s91_s15 }
   0x5   :  { %p98_p3 = por %p97_p2, %p96_p1 }
   0x7   :  { %p99_p4 = pnand %p98_p3, %p92_p0 }
   0x9   :  { %102 = shalt.err (!%p99_p4)  }
   0xa   :  { %s137_s16 = smov [#allocation5]  }
   0xb   :  { %11 = dma.vmem_to_smem %s9_s14, 16, %s137_s16, [#allocation4] }
   0xc   :  { %129 = dma.done.wait [#allocation4], 16 }
   0xd   :  { %130 = vsyncadd [#allocation4], 4294967280 }
   0xe   :  { %13 = sfence }
   0xf   :  { %14 = vsyncpa [#allocation7], 0  ;;  %v19_v0 = vld [vmem:[%s192_s2] sm:$0xff]  ;;  %vm21_vm0 = vcmask 261120   ;;  %v20_v1 = vld [vmem:[%s192_s2 + $0x8] sm:$0xff]  ;;  %s133_s20 = smov 0  }
  0x10   :  { %22 = vst.msk [vmem:[#allocation2] sm:$0xff] %vm21_vm0, %v19_v0  ;;  %23 = vst.msk [vmem:[#allocation2 + $0x8] sm:$0xff] %vm21_vm0, %v20_v1 }
  0x11 LB: > { %v138_v2 = vmov 0   ;;  %s31_s23 = scalar_lea.vmem %s191_s1, %s135_s20  ;;  %s30_s24 = sld [smem:[#allocation5 + %s135_s20]]  ;;  %vm46_vm1 = vcmask 253952   ;;  %s135_s20 = sphi %s133_s20, %s29_s20  }
  0x12   : > { %90 = vset.pattern.permute.xlu0 %v138_v2  ;;  %v32_v3 = vld [vmem:[%s31_s23] sm:$0x1]  ;;  %s33_s25 = scalar_lea.vmem [#allocation2], %s135_s20  ;;  %s45_s26 = scalar_lea.vmem [#allocation3], %s135_s20 }
  0x13   : > { %40 = vperm.xlu0 %90, %v32_v3   ;;  %s29_s20 = sadd.s32 1, %s135_s20  }
  0x14   : > { %p26_p5 = scmp.ge.s32.totalorder %s29_s20, 16  }
  0x15   :  { %s139_s27 = smov (%p26_p5), [#allocation6]  }
  0x16   :  { %s57_s28 = sshll.u32 (%p26_p5), %s139_s27, 4  ;;  %s58_s28 = int_to_ptr.vmem [resolvable:$true] %s57_s28 }
  0x17   : > { %v34_v4 = vld [vmem:[%s33_s25] sm:$0x1]  ;;  %s35_s2 = scalar_lea.vmem [#allocation2], %s30_s24  ;;  %s103_s29 = scalar_lea.vmem (%p26_p5), %s58_s28, 256 }
  0x18   : > { %v36_v5 = vld [vmem:[%s35_s2] sm:$0x1]  ;;  %p104_p6 = scmp.ne.s32.totalorder (%p26_p5), %s58_s28, %s103_s29  ;;  %p108_p7 = scmp.lt.s32.totalorder (%p26_p5), %s58_s28, %s58_s28 }
  0x19   : > { %v37_v6 = vsub.f32 %v36_v5, %v34_v4  ;;  %p109_p8 = scmp.lt.s32.totalorder (%p26_p5), %s103_s29, %s103_s29 }
  0x1b   :  { %p110_p9 = por (%p26_p5), %p109_p8, %p108_p7 }
  0x1d   :  { %p111_p10 = pnand (%p26_p5), %p110_p9, %p104_p6 }
  0x91   :  { %28 = sbr.rel (!%p26_p5) target bundleno = 17 (0x11), region = 39 }
  0x92   : > { %v41_v7 = vpop.permute.xlu0 %40 }
  0x93   : > { %v43_v8 = vmul.f32 %v41_v7, %v37_v6 }
  0x95   : > { %v44_v9 = vadd.f32 %v43_v8, %v34_v4 }
  0x97   : > { %47 = vst.msk [vmem:[%s45_s26] sm:$0x1] %vm46_vm1, %v44_v9 }
  0x9e   :  { %v48_v10 = vld [vmem:[#allocation3] sm:$0xff]  ;;  %v49_v11 = vld [vmem:[#allocation3 + $0x8] sm:$0xff] }
  0x9f   :  { %50 = vst.msk [vmem:[#allocation6] sm:$0xff] %vm21_vm0, %v48_v10  ;;  %51 = vst.msk [vmem:[#allocation6 + $0x8] sm:$0xff] %vm21_vm0, %v49_v11 }
  0xa0   :  { %114 = shalt.err (!%p111_p10)
}
  0xa1   :  { %s115_s5 = scalar_lea.hbm %s193_s3, 256 }
  0xa2   :  { %p116_p11 = scmp.ne.s32.totalorder %s193_s3, %s115_s5  ;;  %p119_p12 = scmp.lt.u32.totalorder %s115_s5, %s193_s3 }
  0xa4   :  { %p121_p13 = pnand %p119_p12, %p116_p11 }
  0xa6   :  { %124 = shalt.err (!%p121_p13)
}
  0xa7   :  { %s140_s9 = smov 128   ;;  %s141_s10 = smov 8  }
  0xa8   :  { %63 = dma.vmem_to_hbm [thread:$0]  %s58_s28, 256, %s193_s3, [#allocation7], %s140_s9, %s140_s9, %s141_s10  }
  0xa9   :  { %131 = dma.done.wait [#allocation7], 256  }
  0xaa   :  { %132 = vsyncadd [#allocation7], 4294967040 }
  0xab   :  { %67 = vsyncpa [#allocation7], 1 }

</bundles_post_ra>
